<compile_context>
chip_gen: v7x
topology: tpu7x:2x2x1
jax: 0.10.0
libtpu: 0.0.40
codegen_flags: <defaults>
</compile_context>

<pallas_src>
import numpy as np
import jax
import jax.numpy as jnp
from jax import lax
from jax.experimental import pallas as pl
from jax.experimental.pallas import tpu as pltpu

EPS = 1e-5


def _make_basic_block_kernel(N, C, HW, eps=EPS):
    """Builds the fused conv1-bn1-relu-conv2-bn2-add-relu kernel.

    Kernel operand layout (all f32, all VMEM, 3 DMAs total incl. the output):
      x_ref : (N, C, HW)          lane-dense activation slab (zero-copy view of NCHW)
      p_ref : (C, 2*C + 4 + HW)   packed params: [ w1 | w2 | g1 b1 g2 b2 | conv1 mask ]
      o_ref : (N, C, HW)
    """
    inv_m = 1.0 / float(N * HW)          # BN reduces over all (n, h, w) positions

    def conv1x1(w, xn):
        # 1x1 conv on one sample, channel-vectorized: rank-1 accumulation over
        # input channels.  w[:, c] lane-broadcasts, xn[c, :] sublane-broadcasts,
        # so every multiply/add is a full (C, HW) VPU op (no SMEM scalar splats).
        acc = w[:, 0:1] * xn[0:1, :]
        for c in range(1, C):
            acc = acc + w[:, c:c + 1] * xn[c:c + 1, :]
        return acc

    def batch_stats(ys):
        # Training-mode BatchNorm statistics over (n, h, w): one lane reduction
        # per sample for the sum and one for the sum of squares (2*N reductions
        # per BN stage instead of 8*C tiny ones).
        s1 = jnp.sum(ys[0], axis=1, keepdims=True)
        s2 = jnp.sum(ys[0] * ys[0], axis=1, keepdims=True)
        for y in ys[1:]:
            s1 = s1 + jnp.sum(y, axis=1, keepdims=True)
            s2 = s2 + jnp.sum(y * y, axis=1, keepdims=True)
        mean = s1 * inv_m                                    # (C, 1)
        # One-pass variance can go slightly negative for near-constant channels;
        # clamp before rsqrt (review correctness note).  Biased var, as PyTorch fwd.
        var = jnp.maximum(s2 * inv_m - mean * mean, 0.0)
        return mean, var

    def kernel(x_ref, p_ref, o_ref):
        P = p_ref[...]                                       # (C, 2C+4+HW), one tile
        w1 = P[:, 0:C]                                       # (C, C)
        w2 = P[:, C:2 * C]                                   # (C, C)
        g1 = P[:, 2 * C + 0:2 * C + 1]                       # (C, 1)
        b1 = P[:, 2 * C + 1:2 * C + 2]
        g2 = P[:, 2 * C + 2:2 * C + 3]
        b2 = P[:, 2 * C + 3:2 * C + 4]
        mask = P[0:1, 2 * C + 4:2 * C + 4 + HW]              # (1, HW) static conv1 mask

        xs = [x_ref[n] for n in range(N)]                    # N x (C, HW), f32

        # ---- conv1 (1x1; stride/padding sampling folded into the static mask) ----
        ys = [conv1x1(w1, xn) * mask for xn in xs]

        # ---- bn1 + relu ----
        mean, var = batch_stats(ys)
        scale = g1 * lax.rsqrt(var + eps)
        shift = b1 - mean * scale
        hs = [jnp.maximum(y * scale + shift, 0.0) for y in ys]

        # ---- conv2 (1x1, stride 1) ----
        zs = [conv1x1(w2, h) for h in hs]

        # ---- bn2 + residual + relu, stored directly (no stack/concat epilogue) ----
        mean, var = batch_stats(zs)
        scale = g2 * lax.rsqrt(var + eps)
        shift = b2 - mean * scale
        for n in range(N):
            o_ref[n] = jnp.maximum(zs[n] * scale + shift + xs[n], 0.0)

    return kernel


def basic_block_forward(x, w1, w2, g1, b1, g2, b2, stride):
    """x: NCHW.  w1: (Cout, Cin, 1, 1), w2: (Cout, Cout, 1, 1).  Returns NCHW."""
    N, Cin, H, W = x.shape
    Cout = w1.shape[0]
    pad = 1
    Hout = (H + 2 * pad - 1) // stride + 1
    Wout = (W + 2 * pad - 1) // stride + 1
    if (Hout, Wout, Cout) != (H, W, Cin):
        raise ValueError(
            "BasicBlock residual add requires the conv branch output to match the "
            f"input shape: got ({Hout},{Wout},{Cout}) vs ({H},{W},{Cin})")
    # The static-mask trick assumes every in-range conv1 source pixel coincides
    # with its output pixel (holds for every config that passes the check above).
    for size, n_out in ((H, Hout), (W, Wout)):
        for i in range(n_out):
            src = i * stride - pad
            if 0 <= src < size and src != i:
                raise NotImplementedError(
                    "conv1 sampling with shifted source pixels is not supported")

    C, HW = Cout, H * W

    # Compile-time conv1 validity mask: output pixel (h, w) reads padded input
    # pixel (stride*h - pad, stride*w - pad); out-of-range sources are zero padding.
    mask = np.zeros((Hout, Wout), np.float32)
    for hh in range(Hout):
        sh = hh * stride - pad
        if not (0 <= sh < H):
            continue
        for ww in range(Wout):
            sw = ww * stride - pad
            if 0 <= sw < W:
                mask[hh, ww] = 1.0
    mask_rows = np.ascontiguousarray(np.broadcast_to(mask.reshape(1, HW), (C, HW)))

    # Lane-dense activation slab: zero-copy reshape, no transpose/pad/slice glue.
    xf = x.reshape(N, Cin, HW).astype(jnp.float32)

    # Single packed parameter operand (one sub-KiB DMA instead of four).
    params = jnp.concatenate(
        [w1.reshape(Cout, Cin).astype(jnp.float32),
         w2.reshape(Cout, Cout).astype(jnp.float32),
         jnp.stack([g1, b1, g2, b2], axis=1).astype(jnp.float32),    # (C, 4)
         jnp.asarray(mask_rows)],
        axis=1)                                                      # (C, 2C+4+HW)

    vmem = pl.BlockSpec(memory_space=pltpu.MemorySpace.VMEM)
    kernel = _make_basic_block_kernel(N, C, HW)
    out = pl.pallas_call(
        kernel,
        out_shape=jax.ShapeDtypeStruct((N, C, HW), jnp.float32),
        in_specs=[vmem, vmem],
        out_specs=vmem,
    )(xf, params)
    return out.reshape(N, C, H, W)                                   # zero-copy reshape


def basic_block_reference(x, w1, w2, g1, b1, g2, b2, stride):
    """Pure-JAX NCHW reference mirroring the PyTorch forward (training-mode BN)."""
    def bn(y, g, b):
        m = jnp.mean(y, axis=(0, 2, 3), keepdims=True)
        v = jnp.mean((y - m) ** 2, axis=(0, 2, 3), keepdims=True)
        return (y - m) * lax.rsqrt(v + EPS) * g.reshape(1, -1, 1, 1) + b.reshape(1, -1, 1, 1)

    identity = x
    y = lax.conv_general_dilated(x, w1, window_strides=(stride, stride),
                                 padding=((1, 1), (1, 1)),
                                 dimension_numbers=("NCHW", "OIHW", "NCHW"),
                                 precision=lax.Precision.HIGHEST)
    y = jnp.maximum(bn(y, g1, b1), 0.0)
    y = lax.conv_general_dilated(y, w2, window_strides=(1, 1), padding="VALID",
                                 dimension_numbers=("NCHW", "OIHW", "NCHW"),
                                 precision=lax.Precision.HIGHEST)
    y = bn(y, g2, b2)
    return jnp.maximum(y + identity, 0.0)


if __name__ == "__main__":
    # Small shapes consistent with the module's (quirky) forward:
    # in_channels == out_channels == 8, H = W = 3, stride = 2.
    N, C, H, W = 2, 8, 3, 3
    stride = 2

    key = jax.random.PRNGKey(0)
    kx, kw1, kw2 = jax.random.split(key, 3)

    x = jax.random.normal(kx, (N, C, H, W), dtype=jnp.float32)

    # Deterministic parameter init (PyTorch-default-like: random conv weights,
    # BN gamma=1 / beta=0; BN uses batch statistics as a fresh train-mode module).
    w1 = 0.1 * jax.random.normal(kw1, (C, C, 1, 1), dtype=jnp.float32)   # conv1 weight
    w2 = 0.1 * jax.random.normal(kw2, (C, C, 1, 1), dtype=jnp.float32)   # conv2 weight
    g1 = jnp.ones((C,), jnp.float32); b1 = jnp.zeros((C,), jnp.float32)
    g2 = jnp.ones((C,), jnp.float32); b2 = jnp.zeros((C,), jnp.float32)

    fwd = jax.jit(basic_block_forward, static_argnames=("stride",))
    out = jax.block_until_ready(fwd(x, w1, w2, g1, b1, g2, b2, stride=stride))

    ref = basic_block_reference(x, w1, w2, g1, b1, g2, b2, stride)
    assert out.shape == ref.shape == (N, C, H, W), (out.shape, ref.shape)
    err = float(jnp.max(jnp.abs(out - ref)))
    assert jnp.allclose(out, ref, atol=1e-4, rtol=1e-4), err

    # TODO(synk): `downsample` is None in the default module config, so it is not implemented.
    print("KERNEL_OK")
</pallas_src>

<mosaic_0001>
module attributes {stable_mosaic.version = 11 : i64} {
  func.func @kernel(%arg0: memref<2x8x9xf32, #tpu.memory_space<vmem>>, %arg1: memref<8x29xf32, #tpu.memory_space<vmem>>, %arg2: memref<2x8x9xf32, #tpu.memory_space<vmem>>) attributes {dimension_semantics = [], scalar_prefetch = 0 : i64, scratch_operands = 0 : i64, tpu.core_type = #tpu.core_type<tc>} {
    %c0 = arith.constant 0 : index
    %c0_0 = arith.constant 0 : index
    %0 = vector.load %arg1[%c0, %c0_0] : memref<8x29xf32, #tpu.memory_space<vmem>>, vector<8x29xf32>
    %1 = vector.extract_strided_slice %0 {offsets = [0, 0], sizes = [8, 8], strides = [1, 1]} : vector<8x29xf32> to vector<8x8xf32>
    %2 = vector.extract_strided_slice %0 {offsets = [0, 8], sizes = [8, 8], strides = [1, 1]} : vector<8x29xf32> to vector<8x8xf32>
    %3 = vector.extract_strided_slice %0 {offsets = [0, 16], sizes = [8, 1], strides = [1, 1]} : vector<8x29xf32> to vector<8x1xf32>
    %4 = vector.extract_strided_slice %0 {offsets = [0, 17], sizes = [8, 1], strides = [1, 1]} : vector<8x29xf32> to vector<8x1xf32>
    %5 = vector.extract_strided_slice %0 {offsets = [0, 18], sizes = [8, 1], strides = [1, 1]} : vector<8x29xf32> to vector<8x1xf32>
    %6 = vector.extract_strided_slice %0 {offsets = [0, 19], sizes = [8, 1], strides = [1, 1]} : vector<8x29xf32> to vector<8x1xf32>
    %7 = vector.extract_strided_slice %0 {offsets = [0, 20], sizes = [1, 9], strides = [1, 1]} : vector<8x29xf32> to vector<1x9xf32>
    %c0_1 = arith.constant 0 : index
    %c0_2 = arith.constant 0 : index
    %c0_3 = arith.constant 0 : index
    %8 = vector.load %arg0[%c0_1, %c0_2, %c0_3] : memref<2x8x9xf32, #tpu.memory_space<vmem>>, vector<1x8x9xf32>
    %9 = vector.shape_cast %8 : vector<1x8x9xf32> to vector<8x9xf32>
    %c1 = arith.constant 1 : index
    %c0_4 = arith.constant 0 : index
    %c0_5 = arith.constant 0 : index
    %10 = vector.load %arg0[%c1, %c0_4, %c0_5] : memref<2x8x9xf32, #tpu.memory_space<vmem>>, vector<1x8x9xf32>
    %11 = vector.shape_cast %10 : vector<1x8x9xf32> to vector<8x9xf32>
    %12 = vector.extract_strided_slice %1 {offsets = [0, 0], sizes = [8, 1], strides = [1, 1]} : vector<8x8xf32> to vector<8x1xf32>
    %13 = vector.extract_strided_slice %9 {offsets = [0, 0], sizes = [1, 9], strides = [1, 1]} : vector<8x9xf32> to vector<1x9xf32>
    %14 = vector.broadcast %12 : vector<8x1xf32> to vector<8x9xf32>
    %15 = vector.broadcast %13 : vector<1x9xf32> to vector<8x9xf32>
    %16 = arith.mulf %14, %15 : vector<8x9xf32>
    %17 = vector.extract_strided_slice %1 {offsets = [0, 1], sizes = [8, 1], strides = [1, 1]} : vector<8x8xf32> to vector<8x1xf32>
    %18 = vector.extract_strided_slice %9 {offsets = [1, 0], sizes = [1, 9], strides = [1, 1]} : vector<8x9xf32> to vector<1x9xf32>
    %19 = vector.broadcast %17 : vector<8x1xf32> to vector<8x9xf32>
    %20 = vector.broadcast %18 : vector<1x9xf32> to vector<8x9xf32>
    %21 = arith.mulf %19, %20 : vector<8x9xf32>
    %22 = arith.addf %16, %21 : vector<8x9xf32>
    %23 = vector.extract_strided_slice %1 {offsets = [0, 2], sizes = [8, 1], strides = [1, 1]} : vector<8x8xf32> to vector<8x1xf32>
    %24 = vector.extract_strided_slice %9 {offsets = [2, 0], sizes = [1, 9], strides = [1, 1]} : vector<8x9xf32> to vector<1x9xf32>
    %25 = vector.broadcast %23 : vector<8x1xf32> to vector<8x9xf32>
    %26 = vector.broadcast %24 : vector<1x9xf32> to vector<8x9xf32>
    %27 = arith.mulf %25, %26 : vector<8x9xf32>
    %28 = arith.addf %22, %27 : vector<8x9xf32>
    %29 = vector.extract_strided_slice %1 {offsets = [0, 3], sizes = [8, 1], strides = [1, 1]} : vector<8x8xf32> to vector<8x1xf32>
    %30 = vector.extract_strided_slice %9 {offsets = [3, 0], sizes = [1, 9], strides = [1, 1]} : vector<8x9xf32> to vector<1x9xf32>
    %31 = vector.broadcast %29 : vector<8x1xf32> to vector<8x9xf32>
    %32 = vector.broadcast %30 : vector<1x9xf32> to vector<8x9xf32>
    %33 = arith.mulf %31, %32 : vector<8x9xf32>
    %34 = arith.addf %28, %33 : vector<8x9xf32>
    %35 = vector.extract_strided_slice %1 {offsets = [0, 4], sizes = [8, 1], strides = [1, 1]} : vector<8x8xf32> to vector<8x1xf32>
    %36 = vector.extract_strided_slice %9 {offsets = [4, 0], sizes = [1, 9], strides = [1, 1]} : vector<8x9xf32> to vector<1x9xf32>
    %37 = vector.broadcast %35 : vector<8x1xf32> to vector<8x9xf32>
    %38 = vector.broadcast %36 : vector<1x9xf32> to vector<8x9xf32>
    %39 = arith.mulf %37, %38 : vector<8x9xf32>
    %40 = arith.addf %34, %39 : vector<8x9xf32>
    %41 = vector.extract_strided_slice %1 {offsets = [0, 5], sizes = [8, 1], strides = [1, 1]} : vector<8x8xf32> to vector<8x1xf32>
    %42 = vector.extract_strided_slice %9 {offsets = [5, 0], sizes = [1, 9], strides = [1, 1]} : vector<8x9xf32> to vector<1x9xf32>
    %43 = vector.broadcast %41 : vector<8x1xf32> to vector<8x9xf32>
    %44 = vector.broadcast %42 : vector<1x9xf32> to vector<8x9xf32>
    %45 = arith.mulf %43, %44 : vector<8x9xf32>
    %46 = arith.addf %40, %45 : vector<8x9xf32>
    %47 = vector.extract_strided_slice %1 {offsets = [0, 6], sizes = [8, 1], strides = [1, 1]} : vector<8x8xf32> to vector<8x1xf32>
    %48 = vector.extract_strided_slice %9 {offsets = [6, 0], sizes = [1, 9], strides = [1, 1]} : vector<8x9xf32> to vector<1x9xf32>
    %49 = vector.broadcast %47 : vector<8x1xf32> to vector<8x9xf32>
    %50 = vector.broadcast %48 : vector<1x9xf32> to vector<8x9xf32>
    %51 = arith.mulf %49, %50 : vector<8x9xf32>
    %52 = arith.addf %46, %51 : vector<8x9xf32>
    %53 = vector.extract_strided_slice %1 {offsets = [0, 7], sizes = [8, 1], strides = [1, 1]} : vector<8x8xf32> to vector<8x1xf32>
    %54 = vector.extract_strided_slice %9 {offsets = [7, 0], sizes = [1, 9], strides = [1, 1]} : vector<8x9xf32> to vector<1x9xf32>
    %55 = vector.broadcast %53 : vector<8x1xf32> to vector<8x9xf32>
    %56 = vector.broadcast %54 : vector<1x9xf32> to vector<8x9xf32>
    %57 = arith.mulf %55, %56 : vector<8x9xf32>
    %58 = arith.addf %52, %57 : vector<8x9xf32>
    %59 = vector.broadcast %7 : vector<1x9xf32> to vector<8x9xf32>
    %60 = arith.mulf %58, %59 : vector<8x9xf32>
    %61 = vector.extract_strided_slice %1 {offsets = [0, 0], sizes = [8, 1], strides = [1, 1]} : vector<8x8xf32> to vector<8x1xf32>
    %62 = vector.extract_strided_slice %11 {offsets = [0, 0], sizes = [1, 9], strides = [1, 1]} : vector<8x9xf32> to vector<1x9xf32>
    %63 = vector.broadcast %61 : vector<8x1xf32> to vector<8x9xf32>
    %64 = vector.broadcast %62 : vector<1x9xf32> to vector<8x9xf32>
    %65 = arith.mulf %63, %64 : vector<8x9xf32>
    %66 = vector.extract_strided_slice %1 {offsets = [0, 1], sizes = [8, 1], strides = [1, 1]} : vector<8x8xf32> to vector<8x1xf32>
    %67 = vector.extract_strided_slice %11 {offsets = [1, 0], sizes = [1, 9], strides = [1, 1]} : vector<8x9xf32> to vector<1x9xf32>
    %68 = vector.broadcast %66 : vector<8x1xf32> to vector<8x9xf32>
    %69 = vector.broadcast %67 : vector<1x9xf32> to vector<8x9xf32>
    %70 = arith.mulf %68, %69 : vector<8x9xf32>
    %71 = arith.addf %65, %70 : vector<8x9xf32>
    %72 = vector.extract_strided_slice %1 {offsets = [0, 2], sizes = [8, 1], strides = [1, 1]} : vector<8x8xf32> to vector<8x1xf32>
    %73 = vector.extract_strided_slice %11 {offsets = [2, 0], sizes = [1, 9], strides = [1, 1]} : vector<8x9xf32> to vector<1x9xf32>
    %74 = vector.broadcast %72 : vector<8x1xf32> to vector<8x9xf32>
    %75 = vector.broadcast %73 : vector<1x9xf32> to vector<8x9xf32>
    %76 = arith.mulf %74, %75 : vector<8x9xf32>
    %77 = arith.addf %71, %76 : vector<8x9xf32>
    %78 = vector.extract_strided_slice %1 {offsets = [0, 3], sizes = [8, 1], strides = [1, 1]} : vector<8x8xf32> to vector<8x1xf32>
    %79 = vector.extract_strided_slice %11 {offsets = [3, 0], sizes = [1, 9], strides = [1, 1]} : vector<8x9xf32> to vector<1x9xf32>
    %80 = vector.broadcast %78 : vector<8x1xf32> to vector<8x9xf32>
    %81 = vector.broadcast %79 : vector<1x9xf32> to vector<8x9xf32>
    %82 = arith.mulf %80, %81 : vector<8x9xf32>
    %83 = arith.addf %77, %82 : vector<8x9xf32>
    %84 = vector.extract_strided_slice %1 {offsets = [0, 4], sizes = [8, 1], strides = [1, 1]} : vector<8x8xf32> to vector<8x1xf32>
    %85 = vector.extract_strided_slice %11 {offsets = [4, 0], sizes = [1, 9], strides = [1, 1]} : vector<8x9xf32> to vector<1x9xf32>
    %86 = vector.broadcast %84 : vector<8x1xf32> to vector<8x9xf32>
    %87 = vector.broadcast %85 : vector<1x9xf32> to vector<8x9xf32>
    %88 = arith.mulf %86, %87 : vector<8x9xf32>
    %89 = arith.addf %83, %88 : vector<8x9xf32>
    %90 = vector.extract_strided_slice %1 {offsets = [0, 5], sizes = [8, 1], strides = [1, 1]} : vector<8x8xf32> to vector<8x1xf32>
    %91 = vector.extract_strided_slice %11 {offsets = [5, 0], sizes = [1, 9], strides = [1, 1]} : vector<8x9xf32> to vector<1x9xf32>
    %92 = vector.broadcast %90 : vector<8x1xf32> to vector<8x9xf32>
    %93 = vector.broadcast %91 : vector<1x9xf32> to vector<8x9xf32>
    %94 = arith.mulf %92, %93 : vector<8x9xf32>
    %95 = arith.addf %89, %94 : vector<8x9xf32>
    %96 = vector.extract_strided_slice %1 {offsets = [0, 6], sizes = [8, 1], strides = [1, 1]} : vector<8x8xf32> to vector<8x1xf32>
    %97 = vector.extract_strided_slice %11 {offsets = [6, 0], sizes = [1, 9], strides = [1, 1]} : vector<8x9xf32> to vector<1x9xf32>
    %98 = vector.broadcast %96 : vector<8x1xf32> to vector<8x9xf32>
    %99 = vector.broadcast %97 : vector<1x9xf32> to vector<8x9xf32>
    %100 = arith.mulf %98, %99 : vector<8x9xf32>
    %101 = arith.addf %95, %100 : vector<8x9xf32>
    %102 = vector.extract_strided_slice %1 {offsets = [0, 7], sizes = [8, 1], strides = [1, 1]} : vector<8x8xf32> to vector<8x1xf32>
    %103 = vector.extract_strided_slice %11 {offsets = [7, 0], sizes = [1, 9], strides = [1, 1]} : vector<8x9xf32> to vector<1x9xf32>
    %104 = vector.broadcast %102 : vector<8x1xf32> to vector<8x9xf32>
    %105 = vector.broadcast %103 : vector<1x9xf32> to vector<8x9xf32>
    %106 = arith.mulf %104, %105 : vector<8x9xf32>
    %107 = arith.addf %101, %106 : vector<8x9xf32>
    %108 = vector.broadcast %7 : vector<1x9xf32> to vector<8x9xf32>
    %109 = arith.mulf %107, %108 : vector<8x9xf32>
    %cst = arith.constant dense<0.000000e+00> : vector<8xf32>
    %110 = vector.multi_reduction <add>, %60, %cst [1] : vector<8x9xf32> to vector<8xf32>
    %111 = vector.shape_cast %110 : vector<8xf32> to vector<8x1xf32>
    %112 = arith.mulf %60, %60 : vector<8x9xf32>
    %cst_6 = arith.constant dense<0.000000e+00> : vector<8xf32>
    %113 = vector.multi_reduction <add>, %112, %cst_6 [1] : vector<8x9xf32> to vector<8xf32>
    %114 = vector.shape_cast %113 : vector<8xf32> to vector<8x1xf32>
    %cst_7 = arith.constant dense<0.000000e+00> : vector<8xf32>
    %115 = vector.multi_reduction <add>, %109, %cst_7 [1] : vector<8x9xf32> to vector<8xf32>
    %116 = vector.shape_cast %115 : vector<8xf32> to vector<8x1xf32>
    %117 = arith.addf %111, %116 : vector<8x1xf32>
    %118 = arith.mulf %109, %109 : vector<8x9xf32>
    %cst_8 = arith.constant dense<0.000000e+00> : vector<8xf32>
    %119 = vector.multi_reduction <add>, %118, %cst_8 [1] : vector<8x9xf32> to vector<8xf32>
    %120 = vector.shape_cast %119 : vector<8xf32> to vector<8x1xf32>
    %121 = arith.addf %114, %120 : vector<8x1xf32>
    %cst_9 = arith.constant 0.055555556 : f32
    %122 = vector.broadcast %cst_9 : f32 to vector<8x1xf32>
    %123 = arith.mulf %117, %122 : vector<8x1xf32>
    %cst_10 = arith.constant 0.055555556 : f32
    %124 = vector.broadcast %cst_10 : f32 to vector<8x1xf32>
    %125 = arith.mulf %121, %124 : vector<8x1xf32>
    %126 = arith.mulf %123, %123 : vector<8x1xf32>
    %127 = arith.subf %125, %126 : vector<8x1xf32>
    %cst_11 = arith.constant 0.000000e+00 : f32
    %128 = vector.broadcast %cst_11 : f32 to vector<8x1xf32>
    %129 = arith.maximumf %127, %128 : vector<8x1xf32>
    %cst_12 = arith.constant 9.99999974E-6 : f32
    %130 = vector.broadcast %cst_12 : f32 to vector<8x1xf32>
    %131 = arith.addf %129, %130 : vector<8x1xf32>
    %132 = math.rsqrt %131 : vector<8x1xf32>
    %133 = arith.mulf %3, %132 : vector<8x1xf32>
    %134 = arith.mulf %123, %133 : vector<8x1xf32>
    %135 = arith.subf %4, %134 : vector<8x1xf32>
    %136 = vector.broadcast %133 : vector<8x1xf32> to vector<8x9xf32>
    %137 = arith.mulf %60, %136 : vector<8x9xf32>
    %138 = vector.broadcast %135 : vector<8x1xf32> to vector<8x9xf32>
    %139 = arith.addf %137, %138 : vector<8x9xf32>
    %cst_13 = arith.constant 0.000000e+00 : f32
    %140 = vector.broadcast %cst_13 : f32 to vector<8x9xf32>
    %141 = arith.maximumf %139, %140 : vector<8x9xf32>
    %142 = vector.broadcast %133 : vector<8x1xf32> to vector<8x9xf32>
    %143 = arith.mulf %109, %142 : vector<8x9xf32>
    %144 = vector.broadcast %135 : vector<8x1xf32> to vector<8x9xf32>
    %145 = arith.addf %143, %144 : vector<8x9xf32>
    %cst_14 = arith.constant 0.000000e+00 : f32
    %146 = vector.broadcast %cst_14 : f32 to vector<8x9xf32>
    %147 = arith.maximumf %145, %146 : vector<8x9xf32>
    %148 = vector.extract_strided_slice %2 {offsets = [0, 0], sizes = [8, 1], strides = [1, 1]} : vector<8x8xf32> to vector<8x1xf32>
    %149 = vector.extract_strided_slice %141 {offsets = [0, 0], sizes = [1, 9], strides = [1, 1]} : vector<8x9xf32> to vector<1x9xf32>
    %150 = vector.broadcast %148 : vector<8x1xf32> to vector<8x9xf32>
    %151 = vector.broadcast %149 : vector<1x9xf32> to vector<8x9xf32>
    %152 = arith.mulf %150, %151 : vector<8x9xf32>
    %153 = vector.extract_strided_slice %2 {offsets = [0, 1], sizes = [8, 1], strides = [1, 1]} : vector<8x8xf32> to vector<8x1xf32>
    %154 = vector.extract_strided_slice %141 {offsets = [1, 0], sizes = [1, 9], strides = [1, 1]} : vector<8x9xf32> to vector<1x9xf32>
    %155 = vector.broadcast %153 : vector<8x1xf32> to vector<8x9xf32>
    %156 = vector.broadcast %154 : vector<1x9xf32> to vector<8x9xf32>
    %157 = arith.mulf %155, %156 : vector<8x9xf32>
    %158 = arith.addf %152, %157 : vector<8x9xf32>
    %159 = vector.extract_strided_slice %2 {offsets = [0, 2], sizes = [8, 1], strides = [1, 1]} : vector<8x8xf32> to vector<8x1xf32>
    %160 = vector.extract_strided_slice %141 {offsets = [2, 0], sizes = [1, 9], strides = [1, 1]} : vector<8x9xf32> to vector<1x9xf32>
    %161 = vector.broadcast %159 : vector<8x1xf32> to vector<8x9xf32>
    %162 = vector.broadcast %160 : vector<1x9xf32> to vector<8x9xf32>
    %163 = arith.mulf %161, %162 : vector<8x9xf32>
    %164 = arith.addf %158, %163 : vector<8x9xf32>
    %165 = vector.extract_strided_slice %2 {offsets = [0, 3], sizes = [8, 1], strides = [1, 1]} : vector<8x8xf32> to vector<8x1xf32>
    %166 = vector.extract_strided_slice %141 {offsets = [3, 0], sizes = [1, 9], strides = [1, 1]} : vector<8x9xf32> to vector<1x9xf32>
    %167 = vector.broadcast %165 : vector<8x1xf32> to vector<8x9xf32>
    %168 = vector.broadcast %166 : vector<1x9xf32> to vector<8x9xf32>
    %169 = arith.mulf %167, %168 : vector<8x9xf32>
    %170 = arith.addf %164, %169 : vector<8x9xf32>
    %171 = vector.extract_strided_slice %2 {offsets = [0, 4], sizes = [8, 1], strides = [1, 1]} : vector<8x8xf32> to vector<8x1xf32>
    %172 = vector.extract_strided_slice %141 {offsets = [4, 0], sizes = [1, 9], strides = [1, 1]} : vector<8x9xf32> to vector<1x9xf32>
    %173 = vector.broadcast %171 : vector<8x1xf32> to vector<8x9xf32>
    %174 = vector.broadcast %172 : vector<1x9xf32> to vector<8x9xf32>
    %175 = arith.mulf %173, %174 : vector<8x9xf32>
    %176 = arith.addf %170, %175 : vector<8x9xf32>
    %177 = vector.extract_strided_slice %2 {offsets = [0, 5], sizes = [8, 1], strides = [1, 1]} : vector<8x8xf32> to vector<8x1xf32>
    %178 = vector.extract_strided_slice %141 {offsets = [5, 0], sizes = [1, 9], strides = [1, 1]} : vector<8x9xf32> to vector<1x9xf32>
    %179 = vector.broadcast %177 : vector<8x1xf32> to vector<8x9xf32>
    %180 = vector.broadcast %178 : vector<1x9xf32> to vector<8x9xf32>
    %181 = arith.mulf %179, %180 : vector<8x9xf32>
    %182 = arith.addf %176, %181 : vector<8x9xf32>
    %183 = vector.extract_strided_slice %2 {offsets = [0, 6], sizes = [8, 1], strides = [1, 1]} : vector<8x8xf32> to vector<8x1xf32>
    %184 = vector.extract_strided_slice %141 {offsets = [6, 0], sizes = [1, 9], strides = [1, 1]} : vector<8x9xf32> to vector<1x9xf32>
    %185 = vector.broadcast %183 : vector<8x1xf32> to vector<8x9xf32>
    %186 = vector.broadcast %184 : vector<1x9xf32> to vector<8x9xf32>
    %187 = arith.mulf %185, %186 : vector<8x9xf32>
    %188 = arith.addf %182, %187 : vector<8x9xf32>
    %189 = vector.extract_strided_slice %2 {offsets = [0, 7], sizes = [8, 1], strides = [1, 1]} : vector<8x8xf32> to vector<8x1xf32>
    %190 = vector.extract_strided_slice %141 {offsets = [7, 0], sizes = [1, 9], strides = [1, 1]} : vector<8x9xf32> to vector<1x9xf32>
    %191 = vector.broadcast %189 : vector<8x1xf32> to vector<8x9xf32>
    %192 = vector.broadcast %190 : vector<1x9xf32> to vector<8x9xf32>
    %193 = arith.mulf %191, %192 : vector<8x9xf32>
    %194 = arith.addf %188, %193 : vector<8x9xf32>
    %195 = vector.extract_strided_slice %2 {offsets = [0, 0], sizes = [8, 1], strides = [1, 1]} : vector<8x8xf32> to vector<8x1xf32>
    %196 = vector.extract_strided_slice %147 {offsets = [0, 0], sizes = [1, 9], strides = [1, 1]} : vector<8x9xf32> to vector<1x9xf32>
    %197 = vector.broadcast %195 : vector<8x1xf32> to vector<8x9xf32>
    %198 = vector.broadcast %196 : vector<1x9xf32> to vector<8x9xf32>
    %199 = arith.mulf %197, %198 : vector<8x9xf32>
    %200 = vector.extract_strided_slice %2 {offsets = [0, 1], sizes = [8, 1], strides = [1, 1]} : vector<8x8xf32> to vector<8x1xf32>
    %201 = vector.extract_strided_slice %147 {offsets = [1, 0], sizes = [1, 9], strides = [1, 1]} : vector<8x9xf32> to vector<1x9xf32>
    %202 = vector.broadcast %200 : vector<8x1xf32> to vector<8x9xf32>
    %203 = vector.broadcast %201 : vector<1x9xf32> to vector<8x9xf32>
    %204 = arith.mulf %202, %203 : vector<8x9xf32>
    %205 = arith.addf %199, %204 : vector<8x9xf32>
    %206 = vector.extract_strided_slice %2 {offsets = [0, 2], sizes = [8, 1], strides = [1, 1]} : vector<8x8xf32> to vector<8x1xf32>
    %207 = vector.extract_strided_slice %147 {offsets = [2, 0], sizes = [1, 9], strides = [1, 1]} : vector<8x9xf32> to vector<1x9xf32>
    %208 = vector.broadcast %206 : vector<8x1xf32> to vector<8x9xf32>
    %209 = vector.broadcast %207 : vector<1x9xf32> to vector<8x9xf32>
    %210 = arith.mulf %208, %209 : vector<8x9xf32>
    %211 = arith.addf %205, %210 : vector<8x9xf32>
    %212 = vector.extract_strided_slice %2 {offsets = [0, 3], sizes = [8, 1], strides = [1, 1]} : vector<8x8xf32> to vector<8x1xf32>
    %213 = vector.extract_strided_slice %147 {offsets = [3, 0], sizes = [1, 9], strides = [1, 1]} : vector<8x9xf32> to vector<1x9xf32>
    %214 = vector.broadcast %212 : vector<8x1xf32> to vector<8x9xf32>
    %215 = vector.broadcast %213 : vector<1x9xf32> to vector<8x9xf32>
    %216 = arith.mulf %214, %215 : vector<8x9xf32>
    %217 = arith.addf %211, %216 : vector<8x9xf32>
    %218 = vector.extract_strided_slice %2 {offsets = [0, 4], sizes = [8, 1], strides = [1, 1]} : vector<8x8xf32> to vector<8x1xf32>
    %219 = vector.extract_strided_slice %147 {offsets = [4, 0], sizes = [1, 9], strides = [1, 1]} : vector<8x9xf32> to vector<1x9xf32>
    %220 = vector.broadcast %218 : vector<8x1xf32> to vector<8x9xf32>
    %221 = vector.broadcast %219 : vector<1x9xf32> to vector<8x9xf32>
    %222 = arith.mulf %220, %221 : vector<8x9xf32>
    %223 = arith.addf %217, %222 : vector<8x9xf32>
    %224 = vector.extract_strided_slice %2 {offsets = [0, 5], sizes = [8, 1], strides = [1, 1]} : vector<8x8xf32> to vector<8x1xf32>
    %225 = vector.extract_strided_slice %147 {offsets = [5, 0], sizes = [1, 9], strides = [1, 1]} : vector<8x9xf32> to vector<1x9xf32>
    %226 = vector.broadcast %224 : vector<8x1xf32> to vector<8x9xf32>
    %227 = vector.broadcast %225 : vector<1x9xf32> to vector<8x9xf32>
    %228 = arith.mulf %226, %227 : vector<8x9xf32>
    %229 = arith.addf %223, %228 : vector<8x9xf32>
    %230 = vector.extract_strided_slice %2 {offsets = [0, 6], sizes = [8, 1], strides = [1, 1]} : vector<8x8xf32> to vector<8x1xf32>
    %231 = vector.extract_strided_slice %147 {offsets = [6, 0], sizes = [1, 9], strides = [1, 1]} : vector<8x9xf32> to vector<1x9xf32>
    %232 = vector.broadcast %230 : vector<8x1xf32> to vector<8x9xf32>
    %233 = vector.broadcast %231 : vector<1x9xf32> to vector<8x9xf32>
    %234 = arith.mulf %232, %233 : vector<8x9xf32>
    %235 = arith.addf %229, %234 : vector<8x9xf32>
    %236 = vector.extract_strided_slice %2 {offsets = [0, 7], sizes = [8, 1], strides = [1, 1]} : vector<8x8xf32> to vector<8x1xf32>
    %237 = vector.extract_strided_slice %147 {offsets = [7, 0], sizes = [1, 9], strides = [1, 1]} : vector<8x9xf32> to vector<1x9xf32>
    %238 = vector.broadcast %236 : vector<8x1xf32> to vector<8x9xf32>
    %239 = vector.broadcast %237 : vector<1x9xf32> to vector<8x9xf32>
    %240 = arith.mulf %238, %239 : vector<8x9xf32>
    %241 = arith.addf %235, %240 : vector<8x9xf32>
    %cst_15 = arith.constant dense<0.000000e+00> : vector<8xf32>
    %242 = vector.multi_reduction <add>, %194, %cst_15 [1] : vector<8x9xf32> to vector<8xf32>
    %243 = vector.shape_cast %242 : vector<8xf32> to vector<8x1xf32>
    %244 = arith.mulf %194, %194 : vector<8x9xf32>
    %cst_16 = arith.constant dense<0.000000e+00> : vector<8xf32>
    %245 = vector.multi_reduction <add>, %244, %cst_16 [1] : vector<8x9xf32> to vector<8xf32>
    %246 = vector.shape_cast %245 : vector<8xf32> to vector<8x1xf32>
    %cst_17 = arith.constant dense<0.000000e+00> : vector<8xf32>
    %247 = vector.multi_reduction <add>, %241, %cst_17 [1] : vector<8x9xf32> to vector<8xf32>
    %248 = vector.shape_cast %247 : vector<8xf32> to vector<8x1xf32>
    %249 = arith.addf %243, %248 : vector<8x1xf32>
    %250 = arith.mulf %241, %241 : vector<8x9xf32>
    %cst_18 = arith.constant dense<0.000000e+00> : vector<8xf32>
    %251 = vector.multi_reduction <add>, %250, %cst_18 [1] : vector<8x9xf32> to vector<8xf32>
    %252 = vector.shape_cast %251 : vector<8xf32> to vector<8x1xf32>
    %253 = arith.addf %246, %252 : vector<8x1xf32>
    %cst_19 = arith.constant 0.055555556 : f32
    %254 = vector.broadcast %cst_19 : f32 to vector<8x1xf32>
    %255 = arith.mulf %249, %254 : vector<8x1xf32>
    %cst_20 = arith.constant 0.055555556 : f32
    %256 = vector.broadcast %cst_20 : f32 to vector<8x1xf32>
    %257 = arith.mulf %253, %256 : vector<8x1xf32>
    %258 = arith.mulf %255, %255 : vector<8x1xf32>
    %259 = arith.subf %257, %258 : vector<8x1xf32>
    %cst_21 = arith.constant 0.000000e+00 : f32
    %260 = vector.broadcast %cst_21 : f32 to vector<8x1xf32>
    %261 = arith.maximumf %259, %260 : vector<8x1xf32>
    %cst_22 = arith.constant 9.99999974E-6 : f32
    %262 = vector.broadcast %cst_22 : f32 to vector<8x1xf32>
    %263 = arith.addf %261, %262 : vector<8x1xf32>
    %264 = math.rsqrt %263 : vector<8x1xf32>
    %265 = arith.mulf %5, %264 : vector<8x1xf32>
    %266 = arith.mulf %255, %265 : vector<8x1xf32>
    %267 = arith.subf %6, %266 : vector<8x1xf32>
    %268 = vector.broadcast %265 : vector<8x1xf32> to vector<8x9xf32>
    %269 = arith.mulf %194, %268 : vector<8x9xf32>
    %270 = vector.broadcast %267 : vector<8x1xf32> to vector<8x9xf32>
    %271 = arith.addf %269, %270 : vector<8x9xf32>
    %272 = arith.addf %271, %9 : vector<8x9xf32>
    %cst_23 = arith.constant 0.000000e+00 : f32
    %273 = vector.broadcast %cst_23 : f32 to vector<8x9xf32>
    %274 = arith.maximumf %272, %273 : vector<8x9xf32>
    %c0_24 = arith.constant 0 : index
    %c0_25 = arith.constant 0 : index
    %c0_26 = arith.constant 0 : index
    %275 = vector.load %arg2[%c0_24, %c0_25, %c0_26] : memref<2x8x9xf32, #tpu.memory_space<vmem>>, vector<1x8x9xf32>
    %276 = vector.shape_cast %275 : vector<1x8x9xf32> to vector<8x9xf32>
    %277 = vector.shape_cast %274 : vector<8x9xf32> to vector<1x8x9xf32>
    tpu.vector_store %arg2[%c0_24, %c0_25, %c0_26], %277 {strides = array<i32>} : memref<2x8x9xf32, #tpu.memory_space<vmem>>, vector<1x8x9xf32>,
    %278 = vector.broadcast %265 : vector<8x1xf32> to vector<8x9xf32>
    %279 = arith.mulf %241, %278 : vector<8x9xf32>
    %280 = vector.broadcast %267 : vector<8x1xf32> to vector<8x9xf32>
    %281 = arith.addf %279, %280 : vector<8x9xf32>
    %282 = arith.addf %281, %11 : vector<8x9xf32>
    %cst_27 = arith.constant 0.000000e+00 : f32
    %283 = vector.broadcast %cst_27 : f32 to vector<8x9xf32>
    %284 = arith.maximumf %282, %283 : vector<8x9xf32>
    %c1_28 = arith.constant 1 : index
    %c0_29 = arith.constant 0 : index
    %c0_30 = arith.constant 0 : index
    %285 = vector.load %arg2[%c1_28, %c0_29, %c0_30] : memref<2x8x9xf32, #tpu.memory_space<vmem>>, vector<1x8x9xf32>
    %286 = vector.shape_cast %285 : vector<1x8x9xf32> to vector<8x9xf32>
    %287 = vector.shape_cast %284 : vector<8x9xf32> to vector<1x8x9xf32>
    tpu.vector_store %arg2[%c1_28, %c0_29, %c0_30], %287 {strides = array<i32>} : memref<2x8x9xf32, #tpu.memory_space<vmem>>, vector<1x8x9xf32>,
    return
  }
}

</mosaic_0001>

<bundles_post_ra>
// kernel: basic_block_forward.1
= control target key start
LH: loop header
LB: loop body
LE: loop exit
PB: predicated region body
PF: predicated region fallthrough
CT: control target
= control target key end

     0   :  { %v429_v0 = vmov 2   ;;  %v430_v1 = vmov 0   ;;  %v20_v3 = vlaneseq  ;;  %v431_v5 = vmov 3   ;;  %s609_s1 = inlined_call_operand.vmem [shape: f32[8,29], index: 1, kind: input, shape index: {}]   ;;  %s610_s0 = inlined_call_operand.vmem [shape: f32[2,8,9], index: 0, kind: input, shape index: {}]   ;;  %s611_s2 = inlined_call_operand.vmem [shape: f32[2,8,9], index: 2, kind: output, shape index: {}]  }
   0x1   :  { %406 = vset.pattern.permute.xlu1 %v429_v0  ;;  %404 = vset.pattern.permute.xlu0 %v430_v1  ;;  %v469_v2 = vld [vmem:[%s609_s1] sm:$0xff]  ;;  %v432_v6 = vmov 1   ;;  %v433_v8 = vmov 4   ;;  %v434_v9 = vmov 5   ;;  %v435_v11 = vmov 6   ;;  %s436_s1 = smov 108  }
   0x2   :  { %36 = vperm.xlu1 %406, %v469_v2   ;;  %17 = vperm.xlu0 %404, %v469_v2   ;;  %v473_v4 = vshrl.u32 %v20_v3, 7  ;;  %v437_v12 = vmov 7   ;;  %v495_v17 = vld [vmem:[%s610_s0] sm:$0xff]  ;;  %v500_v18 = vld [vmem:[%s610_s0 + $0x8] sm:$0xff]  ;;  %vm152_vm0 = vcmask 72704   ;;  %s440_s0 = smov 1  }
   0x4   :  { %v478_v7 = vsub.s32 0, %v473_v4  ;;  %v487_v13 = vsub.s32 1, %v473_v4  ;;  %v490_v14 = vsub.s32 2, %v473_v4  ;;  %v503_v19 = vsub.s32 3, %v473_v4 }
   0x5   :  { %v514_v24 = vsub.s32 4, %v473_v4  ;;  %v525_v31 = vsub.s32 5, %v473_v4  ;;  %v536_v44 = vsub.s32 6, %v473_v4  ;;  %v539_v55 = vsub.s32 7, %v473_v4 }
   0x6   :  { %407 = vset.pattern.permute.xlu1 %v431_v5  ;;  %405 = vset.pattern.permute.xlu0 %v432_v6  ;;  %v98_v10 = vrot.slane %v469_v2, %v478_v7  ;;  %v23_v20 = vrot.slane %v495_v17, %v478_v7  ;;  %v107_v21 = vrot.slane %v500_v18, %v478_v7 }
   0x7   :  { %46 = vperm.xlu1 %407, %v469_v2   ;;  %26 = vperm.xlu0 %405, %v469_v2   ;;  %v32_v22 = vrot.slane %v495_v17, %v487_v13  ;;  %v112_v23 = vrot.slane %v500_v18, %v487_v13  ;;  %v42_v25 = vrot.slane %v495_v17, %v490_v14 }
   0x8   :  { %v118_v26 = vrot.slane %v500_v18, %v490_v14  ;;  %v52_v28 = vrot.slane %v495_v17, %v503_v19  ;;  %v124_v29 = vrot.slane %v500_v18, %v503_v19  ;;  %v62_v36 = vrot.slane %v495_v17, %v514_v24 }
   0x9   :  { %v130_v37 = vrot.slane %v500_v18, %v514_v24  ;;  %v72_v42 = vrot.slane %v495_v17, %v525_v31  ;;  %v136_v43 = vrot.slane %v500_v18, %v525_v31  ;;  %v82_v58 = vrot.slane %v495_v17, %v536_v44 }
   0xa   :  { %v142_v59 = vrot.slane %v500_v18, %v536_v44  ;;  %v92_v63 = vrot.slane %v495_v17, %v539_v55  ;;  %v148_v0 = vrot.slane %v500_v18, %v539_v55 }
   0xb   :  { %408 = vset.pattern.permute.xlu1 %v433_v8  ;;  %409 = vset.pattern.permute.xlu0 %v434_v9 }
   0xc   :  { %56 = vperm.xlu1 %408, %v469_v2   ;;  %66 = vperm.xlu0 %409, %v469_v2  }
  0x10   :  { %410 = vset.pattern.permute.xlu1 %v435_v11  ;;  %100 = vrot.lane.b32.xlu0 %v98_v10, %s436_s1 }
  0x11   :  { %76 = vperm.xlu1 %410, %v469_v2  }
  0x15   :  { %411 = vset.pattern.permute.xlu1 %v437_v12 }
  0x16   :  { %86 = vperm.xlu1 %411, %v469_v2  }
  0x81   :  { %v37_v15 = vpop.permute.xlu1 %36  ;;  %v18_v16 = vpop.permute.xlu0 %17 }
  0x82   :  { %v24_v32 = vmul.f32 %v23_v20, %v18_v16  ;;  %v108_v33 = vmul.f32 %v107_v21, %v18_v16  ;;  %v43_v38 = vmul.f32 %v42_v25, %v37_v15  ;;  %v119_v39 = vmul.f32 %v118_v26, %v37_v15 }
  0x86   :  { %v47_v27 = vpop.permute.xlu1 %46  ;;  %v27_v30 = vpop.permute.xlu0 %26 }
  0x87   :  { %v33_v34 = vmul.f32 %v32_v22, %v27_v30  ;;  %v113_v35 = vmul.f32 %v112_v23, %v27_v30  ;;  %v53_v45 = vmul.f32 %v52_v28, %v47_v27  ;;  %v125_v46 = vmul.f32 %v124_v29, %v47_v27 }
  0x88   :  { %v438_v29 = vmov 16   ;;  %v439_v30 = vmov 8  }
  0x89   :  { %v34_v40 = vadd.f32 %v33_v34, %v24_v32  ;;  %v114_v41 = vadd.f32 %v113_v35, %v108_v33  ;;  %412 = vset.pattern.permute.xlu1 %v438_v29  ;;  %413 = vset.pattern.permute.xlu0 %v439_v30 }
  0x8b   :  { %v44_v47 = vadd.f32 %v43_v38, %v34_v40  ;;  %v120_v48 = vadd.f32 %v119_v39, %v114_v41  ;;  %v57_v49 = vpop.permute.xlu1 %56  ;;  %v67_v50 = vpop.permute.xlu0 %66 }
  0x8c   :  { %v63_v51 = vmul.f32 %v62_v36, %v57_v49  ;;  %v131_v52 = vmul.f32 %v130_v37, %v57_v49  ;;  %v73_v56 = vmul.f32 %v72_v42, %v67_v50  ;;  %v137_v57 = vmul.f32 %v136_v43, %v67_v50 }
  0x8d   :  { %v54_v53 = vadd.f32 %v53_v45, %v44_v47  ;;  %v126_v54 = vadd.f32 %v125_v46, %v120_v48  ;;  %v441_v48 = vmov 17   ;;  %v442_v49 = vmov 11  }
  0x8e   :  { %v443_v50 = vmov 14  }
  0x8f   :  { %v64_v60 = vadd.f32 %v63_v51, %v54_v53  ;;  %v132_v61 = vadd.f32 %v131_v52, %v126_v54  ;;  %v101_v12 = vpop.permute.xlu0 %100  ;;  %v444_v53 = vmov 9   ;;  %v445_v54 = vmov 10  }
  0x90   :  { %v77_v62 = vpop.permute.xlu1 %76 }
  0x91   :  { %v74_v1 = vadd.f32 %v73_v56, %v64_v60  ;;  %v138_v3 = vadd.f32 %v137_v57, %v132_v61  ;;  %v83_v4 = vmul.f32 %v82_v58, %v77_v62  ;;  %v143_v5 = vmul.f32 %v142_v59, %v77_v62 }
  0x92   :  { %v446_v56 = vmov 12   ;;  %v447_v57 = vmov 13   ;;  %v448_v58 = vmov 15  }
  0x93   :  { %v84_v8 = vadd.f32 %v83_v4, %v74_v1  ;;  %v144_v9 = vadd.f32 %v143_v5, %v138_v3 }
  0x95   :  { %v87_v6 = vpop.permute.xlu1 %86 }
  0x96   :  { %v93_v10 = vmul.f32 %v92_v63, %v87_v6  ;;  %v149_v11 = vmul.f32 %v148_v0, %v87_v6 }
  0x98   :  { %v94_v15 = vadd.f32 %v93_v10, %v84_v8  ;;  %v150_v16 = vadd.f32 %v149_v11, %v144_v9 }
  0x9a   :  { %v549_v20 = vmul.f32 %v101_v12, %v94_v15  ;;  %v551_v21 = vmul.f32 %v150_v16, %v101_v12 }
  0x9c   :  { %v160_v22 = vsel %vm152_vm0, %v551_v21, 0.0  ;;  %v153_v23 = vsel %vm152_vm0, %v549_v20, 0.0  ;;  %v156_v25 = vmul.f32 %v549_v20, %v549_v20  ;;  %v164_v26 = vmul.f32 %v551_v21, %v551_v21 }
  0x9d   :  { %161 = vadd.xlane.f32.xlu0 %v160_v22  ;;  %154 = vadd.xlane.f32.xlu1 %v153_v23 }
  0x9e   :  { %v157_v27 = vsel %vm152_vm0, %v156_v25, 0.0  ;;  %v165_v28 = vsel %vm152_vm0, %v164_v26, 0.0 }
  0xa1   :  { %158 = vadd.xlane.f32.xlu0 %v157_v27  ;;  %166 = vadd.xlane.f32.xlu1 %v165_v28 }
 0x12a   :  { %v162_v32 = vpop.xlane.xlu0 %161  ;;  %v155_v33 = vpop.xlane.xlu1 %154 }
 0x12b   :  { %v163_v34 = vadd.f32 %v162_v32, %v155_v33 }
 0x12d   :  { %v169_v35 = vmul.f32 0.055555556, %v163_v34 }
 0x12e   :  { %v159_v36 = vpop.xlane.xlu0 %158  ;;  %v167_v37 = vpop.xlane.xlu1 %166 }
 0x12f   :  { %v168_v38 = vadd.f32 %v167_v37, %v159_v36  ;;  %v171_v39 = vmul.f32 %v169_v35, %v169_v35 }
 0x131   :  { %v170_v40 = vmul.f32 0.055555556, %v168_v38 }
 0x133   :  { %v172_v41 = vsub.f32 %v170_v40, %v171_v39 }
 0x135   :  { %v173_v42 = vmax.f32 %v172_v41, 0.0 }
 0x137   :  { %v174_v43 = vadd.f32 1e-05, %v173_v42 }
 0x139   :  { %425 = vrsqrt.f32 %v174_v43 }
 0x143   :  { %v426_v45 = vpop.eup %425 }
 0x144   :  { %v176_v46 = vmul.f32 %v426_v45, %v469_v2 }
 0x146   :  { %185 = vperm.xlu1 %412, %v176_v46   ;;  %v177_v47 = vmul.f32 %v176_v46, %v169_v35 }
 0x148   :  { %179 = vrot.lane.b32.xlu0 %v177_v47, %s440_s0 }
 0x14a   :  { %414 = vset.pattern.permute.xlu1 %v441_v48 }
 0x14c   :  { %200 = vperm.xlu0 %413, %v469_v2  }
 0x150   :  { %417 = vset.pattern.permute.xlu0 %v442_v49 }
 0x151   :  { %229 = vperm.xlu0 %417, %v469_v2  }
 0x155   :  { %420 = vset.pattern.permute.xlu0 %v443_v50 }
 0x156   :  { %259 = vperm.xlu0 %420, %v469_v2  }
 0x1ba   :  { %v180_v51 = vpop.permute.xlu0 %179 }
 0x1bb   :  { %v182_v52 = vsub.f32 %v469_v2, %v180_v51 }
 0x1bd   :  { %191 = vperm.xlu1 %414, %v182_v52  }
 0x1c1   :  { %415 = vset.pattern.permute.xlu1 %v444_v53 }
 0x1c2   :  { %209 = vperm.xlu1 %415, %v469_v2  }
 0x1c5   :  { %v186_v59 = vpop.permute.xlu1 %185 }
 0x1c6   :  { %416 = vset.pattern.permute.xlu1 %v445_v54  ;;  %v188_v60 = vmul.f32 %v186_v59, %v549_v20  ;;  %v196_v61 = vmul.f32 %v186_v59, %v551_v21 }
 0x1c7   :  { %219 = vperm.xlu1 %416, %v469_v2  }
 0x1cb   :  { %418 = vset.pattern.permute.xlu1 %v446_v56  ;;  %v201_v8 = vpop.permute.xlu0 %200 }
 0x1cc   :  { %239 = vperm.xlu1 %418, %v469_v2  }
 0x1d0   :  { %419 = vset.pattern.permute.xlu1 %v447_v57 }
 0x1d1   :  { %249 = vperm.xlu1 %419, %v469_v2  }
 0x1d5   :  { %421 = vset.pattern.permute.xlu1 %v448_v58 }
 0x1d6   :  { %269 = vperm.xlu1 %421, %v469_v2  }
 0x23c   :  { %v192_v62 = vpop.permute.xlu1 %191 }
 0x23d   :  { %v194_v63 = vadd.f32 %v192_v62, %v188_v60  ;;  %v197_v0 = vadd.f32 %v196_v61, %v192_v62 }
 0x23f   :  { %v195_v1 = vmax.f32 %v194_v63, 0.0  ;;  %v198_v3 = vmax.f32 %v197_v0, 0.0 }
 0x241   :  { %v206_v4 = vrot.slane %v195_v1, %v478_v7  ;;  %v215_v5 = vrot.slane %v195_v1, %v487_v13  ;;  %v210_v6 = vpop.permute.xlu1 %209  ;;  %v281_v9 = vrot.slane %v198_v3, %v478_v7  ;;  %v286_v10 = vrot.slane %v198_v3, %v487_v13  ;;  %v230_v13 = vpop.permute.xlu0 %229 }
 0x242   :  { %v225_v20 = vrot.slane %v195_v1, %v490_v14  ;;  %v292_v21 = vrot.slane %v198_v3, %v490_v14  ;;  %v235_v22 = vrot.slane %v195_v1, %v503_v19  ;;  %v298_v23 = vrot.slane %v198_v3, %v503_v19 }
 0x243   :  { %v207_v11 = vmul.f32 %v206_v4, %v201_v8  ;;  %v216_v12 = vmul.f32 %v215_v5, %v210_v6  ;;  %v282_v15 = vmul.f32 %v281_v9, %v201_v8  ;;  %v287_v16 = vmul.f32 %v286_v10, %v210_v6 }
 0x244   :  { %v236_v32 = vmul.f32 %v235_v22, %v230_v13  ;;  %v299_v33 = vmul.f32 %v298_v23, %v230_v13  ;;  %v245_v34 = vrot.slane %v195_v1, %v514_v24  ;;  %v304_v35 = vrot.slane %v198_v3, %v514_v24 }
 0x245   :  { %v217_v26 = vadd.f32 %v216_v12, %v207_v11  ;;  %v288_v27 = vadd.f32 %v287_v16, %v282_v15  ;;  %v265_v19 = vrot.slane %v195_v1, %v536_v44  ;;  %v316_v40 = vrot.slane %v198_v3, %v536_v44  ;;  %v260_v43 = vpop.permute.xlu0 %259 }
 0x246   :  { %v220_v25 = vpop.permute.xlu1 %219  ;;  %v255_v41 = vrot.slane %v195_v1, %v525_v31  ;;  %v310_v42 = vrot.slane %v198_v3, %v525_v31  ;;  %v275_v53 = vrot.slane %v195_v1, %v539_v55  ;;  %v322_v54 = vrot.slane %v198_v3, %v539_v55 }
 0x247   :  { %v226_v28 = vmul.f32 %v225_v20, %v220_v25  ;;  %v293_v29 = vmul.f32 %v292_v21, %v220_v25  ;;  %v266_v24 = vmul.f32 %v265_v19, %v260_v43  ;;  %v317_v50 = vmul.f32 %v316_v40, %v260_v43 }
 0x248   :  { %v449_v55 = vmov 18   ;;  %v450_v22 = vmov 19  }
 0x249   :  { %v227_v7 = vadd.f32 %v226_v28, %v217_v26  ;;  %v294_v30 = vadd.f32 %v293_v29, %v288_v27  ;;  %422 = vset.pattern.permute.xlu1 %v449_v55  ;;  %424 = vset.pattern.permute.xlu0 %v450_v22 }
 0x24b   :  { %v240_v36 = vpop.permute.xlu1 %239  ;;  %v237_v14 = vadd.f32 %v236_v32, %v227_v7  ;;  %v300_v38 = vadd.f32 %v299_v33, %v294_v30 }
 0x24c   :  { %v246_v37 = vmul.f32 %v245_v34, %v240_v36  ;;  %v305_v39 = vmul.f32 %v304_v35, %v240_v36 }
 0x24e   :  { %v247_v46 = vadd.f32 %v246_v37, %v237_v14  ;;  %v306_v47 = vadd.f32 %v305_v39, %v300_v38 }
 0x250   :  { %v250_v45 = vpop.permute.xlu1 %249 }
 0x251   :  { %v256_v48 = vmul.f32 %v255_v41, %v250_v45  ;;  %v311_v49 = vmul.f32 %v310_v42, %v250_v45 }
 0x253   :  { %v257_v51 = vadd.f32 %v256_v48, %v247_v46  ;;  %v312_v52 = vadd.f32 %v311_v49, %v306_v47 }
 0x255   :  { %v270_v56 = vpop.permute.xlu1 %269  ;;  %v267_v44 = vadd.f32 %v266_v24, %v257_v51  ;;  %v318_v57 = vadd.f32 %v317_v50, %v312_v52 }
 0x256   :  { %v276_v58 = vmul.f32 %v275_v53, %v270_v56  ;;  %v323_v59 = vmul.f32 %v322_v54, %v270_v56 }
 0x258   :  { %v277_v31 = vadd.f32 %v276_v58, %v267_v44  ;;  %v324_v60 = vadd.f32 %v323_v59, %v318_v57 }
 0x25a   :  { %v332_v61 = vsel %vm152_vm0, %v324_v60, 0.0  ;;  %v325_v62 = vsel %vm152_vm0, %v277_v31, 0.0  ;;  %v328_v63 = vmul.f32 %v277_v31, %v277_v31  ;;  %v336_v0 = vmul.f32 %v324_v60, %v324_v60 }
 0x25b   :  { %333 = vadd.xlane.f32.xlu0 %v332_v61  ;;  %326 = vadd.xlane.f32.xlu1 %v325_v62 }
 0x25c   :  { %v329_v4 = vsel %vm152_vm0, %v328_v63, 0.0  ;;  %v337_v1 = vsel %vm152_vm0, %v336_v0, 0.0 }
 0x25f   :  { %330 = vadd.xlane.f32.xlu0 %v329_v4  ;;  %338 = vadd.xlane.f32.xlu1 %v337_v1 }
 0x2e8   :  { %v334_v3 = vpop.xlane.xlu0 %333  ;;  %v327_v5 = vpop.xlane.xlu1 %326 }
 0x2e9   :  { %v335_v6 = vadd.f32 %v334_v3, %v327_v5 }
 0x2eb   :  { %v341_v8 = vmul.f32 0.055555556, %v335_v6 }
 0x2ec   :  { %v331_v9 = vpop.xlane.xlu0 %330  ;;  %v339_v10 = vpop.xlane.xlu1 %338 }
 0x2ed   :  { %v340_v11 = vadd.f32 %v339_v10, %v331_v9  ;;  %v343_v12 = vmul.f32 %v341_v8, %v341_v8 }
 0x2ef   :  { %v342_v15 = vmul.f32 0.055555556, %v340_v11 }
 0x2f1   :  { %v344_v16 = vsub.f32 %v342_v15, %v343_v12 }
 0x2f3   :  { %v345_v20 = vmax.f32 %v344_v16, 0.0 }
 0x2f5   :  { %v346_v21 = vadd.f32 1e-05, %v345_v20 }
 0x2f7   :  { %427 = vrsqrt.f32 %v346_v21 }
 0x301   :  { %v428_v23 = vpop.eup %427 }
 0x302   :  { %v348_v25 = vmul.f32 %v428_v23, %v469_v2 }
 0x304   :  { %357 = vperm.xlu1 %422, %v348_v25   ;;  %v349_v26 = vmul.f32 %v348_v25, %v341_v8 }
 0x306   :  { %351 = vrot.lane.b32.xlu0 %v349_v26, %s440_s0 }
 0x308   :  { %423 = vset.pattern.permute.xlu1 %v450_v22 }
 0x378   :  { %v352_v27 = vpop.permute.xlu0 %351 }
 0x379   :  { %v354_v28 = vsub.f32 %v469_v2, %v352_v27 }
 0x37b   :  { %363 = vperm.xlu1 %423, %v354_v28  }
 0x383   :  { %v358_v29 = vpop.permute.xlu1 %357 }
 0x384   :  { %v360_v7 = vmul.f32 %v358_v29, %v277_v31  ;;  %v370_v30 = vmul.f32 %v358_v29, %v324_v60 }
 0x3fa   :  { %v364_v13 = vpop.permute.xlu1 %363 }
 0x3fb   :  { %v366_v32 = vadd.f32 %v364_v13, %v360_v7  ;;  %v371_v33 = vadd.f32 %v370_v30, %v364_v13 }
 0x3fd   :  { %v367_v34 = vadd.f32 %v366_v32, %v495_v17  ;;  %v372_v35 = vadd.f32 %v500_v18, %v371_v33 }
 0x3ff   :  { %v368_v36 = vmax.f32 %v367_v34, 0.0  ;;  %v373_v14 = vmax.f32 %v372_v35, 0.0 }
 0x401   :  { %369 = vst.msk [vmem:[%s611_s2] sm:$0xff] %vm152_vm0, %v368_v36  ;;  %381 = vst.msk [vmem:[%s611_s2 + $0x8] sm:$0xff] %vm152_vm0, %v373_v14 }

</bundles_post_ra>
